<compile_context>
chip_gen: v5e
topology: v5e:2x2
jax: 0.10.0
libtpu: 0.0.40
codegen_flags: <defaults>
</compile_context>

<pallas_src>
import functools

import jax
import jax.numpy as jnp
from jax import lax
from jax.experimental import pallas as pl
from jax.experimental.pallas import tpu as pltpu

LANE = 128
SUBLANE = 8
DEFAULT_TILE_B = 8192   # rows per grid step; ~12 MiB VMEM in flight (v7x-safe)
CHUNK_B = 1024          # inner sub-chunk bounding f32 intermediate live ranges


def _round_up(n, m):
    return (n + m - 1) // m * m


def _leaky_relu(x, slope=0.1):
    return jnp.where(x >= 0, x, slope * x)


def _pi_model_kernel(x_ref, w1_ref, b1_ref, w2_ref, b2_ref, w3_ref, b3_ref,
                     o_ref, *, chunk, num_chunks, num_classes, compute_dtype):
    # Weights / biases: constant index_map -> VMEM-resident, read once here.
    w1 = w1_ref[...]
    w2 = w2_ref[...]
    w3 = w3_ref[...]
    b1 = b1_ref[...]
    b2 = b2_ref[...]
    b3 = b3_ref[...]

    def body(c, carry):
        r = pl.multiple_of(c * chunk, chunk)
        # In-kernel cast (hidden under DMA) instead of a wrapper HBM pass.
        x = x_ref[pl.ds(r, chunk), :].astype(compute_dtype)

        # Dense1 + LeakyReLU(0.1)   (f32 MXU accumulation, f32 elementwise)
        h1 = _leaky_relu(
            jnp.dot(x, w1, preferred_element_type=jnp.float32) + b1)
        # Dense2 + LeakyReLU(0.1)
        h2 = _leaky_relu(
            jnp.dot(h1.astype(compute_dtype), w2,
                    preferred_element_type=jnp.float32) + b2)
        # Dense3 (logits); only the real num_classes lanes are stored.
        h3 = jnp.dot(h2.astype(compute_dtype), w3,
                     preferred_element_type=jnp.float32) + b3
        o_ref[pl.ds(r, chunk), :] = h3[:, :num_classes].astype(o_ref.dtype)
        return carry

    lax.fori_loop(0, num_chunks, body, 0)


def init_params(key, num_features, num_classes):
    """Deterministic init mimicking nn.Linear shapes (stored transposed)."""
    ks = jax.random.split(key, 6)

    def linear(kw, kb, fan_in, fan_out):
        bound = 1.0 / jnp.sqrt(jnp.float32(fan_in))
        # torch stores (out, in); we store transposed (in, out) for x @ W.
        w = jax.random.uniform(kw, (fan_in, fan_out), jnp.float32,
                               -bound, bound)
        b = jax.random.uniform(kb, (1, fan_out), jnp.float32, -bound, bound)
        return w, b

    w1, b1 = linear(ks[0], ks[1], num_features, 10)
    w2, b2 = linear(ks[2], ks[3], 10, 8)
    w3, b3 = linear(ks[4], ks[5], 8, num_classes)
    return dict(w1=w1, b1=b1, w2=w2, b2=b2, w3=w3, b3=b3)


def prepare_params(raw, compute_dtype=jnp.bfloat16):
    """Zero-pad hidden/output dims to 128 lanes and cast weights to bf16.

    Zero padding is exact: padded bias columns are 0, LeakyReLU(0)=0, and the
    matching padded weight rows of the next layer are 0. The padded output
    lanes are never written back to HBM (the kernel stores only num_classes).
    """
    num_features = raw["w1"].shape[0]
    h1, h2, nc = raw["w1"].shape[1], raw["w2"].shape[1], raw["w3"].shape[1]
    h1p, h2p, ncp = (_round_up(d, LANE) for d in (h1, h2, nc))

    def pad_to(a, rows, cols):
        return jnp.pad(a, ((0, rows - a.shape[0]), (0, cols - a.shape[1])))

    return dict(
        w1=pad_to(raw["w1"], num_features, h1p).astype(compute_dtype),
        w2=pad_to(raw["w2"], h1p, h2p).astype(compute_dtype),
        w3=pad_to(raw["w3"], h2p, ncp).astype(compute_dtype),
        b1=pad_to(raw["b1"], 1, h1p).astype(jnp.float32),
        b2=pad_to(raw["b2"], 1, h2p).astype(jnp.float32),
        b3=pad_to(raw["b3"], 1, ncp).astype(jnp.float32),
        num_classes=nc,
        compute_dtype=compute_dtype,
    )


def pi_model_forward(x, params, *, tile_b=DEFAULT_TILE_B):
    """x: (B, num_features) float32. params: output of prepare_params()."""
    w1, b1 = params["w1"], params["b1"]
    w2, b2 = params["w2"], params["b2"]
    w3, b3 = params["w3"], params["b3"]
    num_classes = params["num_classes"]
    compute_dtype = params["compute_dtype"]

    B, F = x.shape

    # Pad the batch only to a sublane multiple; the last grid block may be
    # ragged (rows are independent; OOB writeback is masked by Pallas).
    padded_b = _round_up(B, SUBLANE)
    if padded_b != B:
        x = jnp.pad(x, ((0, padded_b - B), (0, 0)))

    tile_b = min(_round_up(tile_b, SUBLANE), padded_b)
    grid = (pl.cdiv(padded_b, tile_b),)

    if tile_b % CHUNK_B == 0:
        chunk, num_chunks = CHUNK_B, tile_b // CHUNK_B
    else:
        chunk, num_chunks = tile_b, 1

    kernel = functools.partial(
        _pi_model_kernel, chunk=chunk, num_chunks=num_chunks,
        num_classes=num_classes, compute_dtype=compute_dtype)

    def resident(shape):  # weights/biases: same block every step -> no re-DMA
        return pl.BlockSpec(shape, lambda i: (0, 0))

    h1p, h2p, ncp = w1.shape[1], w2.shape[1], w3.shape[1]
    cost = pl.CostEstimate(
        flops=2 * padded_b * (F * h1p + h1p * h2p + h2p * ncp),
        transcendentals=0,
        bytes_accessed=int(
            padded_b * F * x.dtype.itemsize
            + padded_b * num_classes * 4
            + sum(int(a.size) * a.dtype.itemsize
                  for a in (w1, b1, w2, b2, w3, b3))),
    )

    out = pl.pallas_call(
        kernel,
        out_shape=jax.ShapeDtypeStruct((padded_b, num_classes), jnp.float32),
        grid=grid,
        in_specs=[
            pl.BlockSpec((tile_b, F), lambda i: (i, 0)),
            resident(w1.shape), resident(b1.shape),
            resident(w2.shape), resident(b2.shape),
            resident(w3.shape), resident(b3.shape),
        ],
        out_specs=pl.BlockSpec((tile_b, num_classes), lambda i: (i, 0)),
        compiler_params=pltpu.CompilerParams(
            dimension_semantics=("parallel",),  # shard batch tiles on v7x TCs
        ),
        cost_estimate=cost,
    )(x, w1, b1, w2, b2, w3, b3)

    return out[:B]


def reference_forward(x, raw):
    """Pure-JAX f32 reference using the unpadded parameters."""
    h1 = _leaky_relu(x @ raw["w1"] + raw["b1"])
    h2 = _leaky_relu(h1 @ raw["w2"] + raw["b2"])
    return h2 @ raw["w3"] + raw["b3"]


if __name__ == "__main__":
    num_features = 32
    num_classes = 4
    batch = 8  # small demo shape; kernel tiles/pipelines for large B

    key = jax.random.PRNGKey(0)
    kx, kp = jax.random.split(key)
    x = jax.random.normal(kx, (batch, num_features), jnp.float32)

    raw_params = init_params(kp, num_features, num_classes)
    params = prepare_params(raw_params)  # pad to 128 lanes + bf16 cast

    out = pi_model_forward(x, params)
    out = jax.block_until_ready(out)

    ref = reference_forward(x, raw_params)
    assert out.shape == (batch, num_classes)
    # bf16 inputs / weights with f32 accumulation -> loose tolerance vs f32 ref
    assert jnp.allclose(out, ref, atol=5e-2, rtol=5e-2), (
        f"max abs diff {jnp.max(jnp.abs(out - ref))}")

    print("KERNEL_OK")
</pallas_src>

<mosaic_0001>
module attributes {stable_mosaic.version = 11 : i64} {
  func.func @_pi_model_kernel(%arg0: i32, %arg1: memref<8x32xf32, #tpu.memory_space<vmem>>, %arg2: memref<32x128xbf16, #tpu.memory_space<vmem>>, %arg3: memref<1x128xf32, #tpu.memory_space<vmem>>, %arg4: memref<128x128xbf16, #tpu.memory_space<vmem>>, %arg5: memref<1x128xf32, #tpu.memory_space<vmem>>, %arg6: memref<128x128xbf16, #tpu.memory_space<vmem>>, %arg7: memref<1x128xf32, #tpu.memory_space<vmem>>, %arg8: memref<8x4xf32, #tpu.memory_space<vmem>>) attributes {dimension_semantics = [#tpu.dimension_semantics<parallel>], iteration_bounds = array<i64: 1>, scalar_prefetch = 0 : i64, scratch_operands = 0 : i64, tpu.core_type = #tpu.core_type<tc>, window_params = [{transform_indices = @transform_0, window_bounds = array<i64: 8, 32>}, {pipeline_mode = #tpu.pipeline_mode<synchronous>, transform_indices = @transform_1, window_bounds = array<i64: 32, 128>}, {pipeline_mode = #tpu.pipeline_mode<synchronous>, transform_indices = @transform_2, window_bounds = array<i64: 1, 128>}, {pipeline_mode = #tpu.pipeline_mode<synchronous>, transform_indices = @transform_3, window_bounds = array<i64: 128, 128>}, {pipeline_mode = #tpu.pipeline_mode<synchronous>, transform_indices = @transform_4, window_bounds = array<i64: 1, 128>}, {pipeline_mode = #tpu.pipeline_mode<synchronous>, transform_indices = @transform_5, window_bounds = array<i64: 128, 128>}, {pipeline_mode = #tpu.pipeline_mode<synchronous>, transform_indices = @transform_6, window_bounds = array<i64: 1, 128>}, {transform_indices = @transform_7, window_bounds = array<i64: 8, 4>}]} {
    %c0 = arith.constant 0 : index
    %c0_0 = arith.constant 0 : index
    %0 = vector.load %arg2[%c0, %c0_0] : memref<32x128xbf16, #tpu.memory_space<vmem>>, vector<32x128xbf16>
    %c0_1 = arith.constant 0 : index
    %c0_2 = arith.constant 0 : index
    %1 = vector.load %arg4[%c0_1, %c0_2] : memref<128x128xbf16, #tpu.memory_space<vmem>>, vector<128x128xbf16>
    %c0_3 = arith.constant 0 : index
    %c0_4 = arith.constant 0 : index
    %2 = vector.load %arg6[%c0_3, %c0_4] : memref<128x128xbf16, #tpu.memory_space<vmem>>, vector<128x128xbf16>
    %c0_5 = arith.constant 0 : index
    %c0_6 = arith.constant 0 : index
    %3 = vector.load %arg3[%c0_5, %c0_6] : memref<1x128xf32, #tpu.memory_space<vmem>>, vector<1x128xf32>
    %c0_7 = arith.constant 0 : index
    %c0_8 = arith.constant 0 : index
    %4 = vector.load %arg5[%c0_7, %c0_8] : memref<1x128xf32, #tpu.memory_space<vmem>>, vector<1x128xf32>
    %c0_9 = arith.constant 0 : index
    %c0_10 = arith.constant 0 : index
    %5 = vector.load %arg7[%c0_9, %c0_10] : memref<1x128xf32, #tpu.memory_space<vmem>>, vector<1x128xf32>
    %c0_i32 = arith.constant 0 : i32
    %c8_i32 = arith.constant 8 : i32
    %6 = arith.muli %c0_i32, %c8_i32 : i32
    %7 = tpu.assume_multiple %6, 8 : i32
    %8 = arith.index_cast %7 : i32 to index
    %c0_11 = arith.constant 0 : index
    %9 = vector.load %arg1[%8, %c0_11] : memref<8x32xf32, #tpu.memory_space<vmem>>, vector<8x32xf32>
    %10 = arith.truncf %9 : vector<8x32xf32> to vector<8x32xbf16>
    %cst = arith.constant dense<0.000000e+00> : vector<8x128xf32>
    %11 = tpu.matmul %10, %0, %cst {dimension_numbers = #tpu.dot_dimension_numbers<[1], [0], [0], [1], [0, 0, 1, 1], [], []>} : vector<8x32xbf16>, vector<32x128xbf16>, vector<8x128xf32> -> vector<8x128xf32>
    %12 = vector.broadcast %3 : vector<1x128xf32> to vector<8x128xf32>
    %13 = arith.addf %11, %12 : vector<8x128xf32>
    %cst_12 = arith.constant 0.000000e+00 : f32
    %14 = vector.broadcast %cst_12 : f32 to vector<8x128xf32>
    %15 = arith.cmpf oge, %13, %14 : vector<8x128xf32>
    %cst_13 = arith.constant 1.000000e-01 : f32
    %16 = vector.broadcast %cst_13 : f32 to vector<8x128xf32>
    %17 = arith.mulf %16, %13 : vector<8x128xf32>
    %18 = arith.select %15, %13, %17 : vector<8x128xi1>, vector<8x128xf32>
    %19 = arith.truncf %18 : vector<8x128xf32> to vector<8x128xbf16>
    %cst_14 = arith.constant dense<0.000000e+00> : vector<8x128xf32>
    %20 = tpu.matmul %19, %1, %cst_14 {dimension_numbers = #tpu.dot_dimension_numbers<[1], [0], [0], [1], [0, 0, 1, 1], [], []>} : vector<8x128xbf16>, vector<128x128xbf16>, vector<8x128xf32> -> vector<8x128xf32>
    %21 = vector.broadcast %4 : vector<1x128xf32> to vector<8x128xf32>
    %22 = arith.addf %20, %21 : vector<8x128xf32>
    %cst_15 = arith.constant 0.000000e+00 : f32
    %23 = vector.broadcast %cst_15 : f32 to vector<8x128xf32>
    %24 = arith.cmpf oge, %22, %23 : vector<8x128xf32>
    %cst_16 = arith.constant 1.000000e-01 : f32
    %25 = vector.broadcast %cst_16 : f32 to vector<8x128xf32>
    %26 = arith.mulf %25, %22 : vector<8x128xf32>
    %27 = arith.select %24, %22, %26 : vector<8x128xi1>, vector<8x128xf32>
    %28 = arith.truncf %27 : vector<8x128xf32> to vector<8x128xbf16>
    %cst_17 = arith.constant dense<0.000000e+00> : vector<8x128xf32>
    %29 = tpu.matmul %28, %2, %cst_17 {dimension_numbers = #tpu.dot_dimension_numbers<[1], [0], [0], [1], [0, 0, 1, 1], [], []>} : vector<8x128xbf16>, vector<128x128xbf16>, vector<8x128xf32> -> vector<8x128xf32>
    %30 = vector.broadcast %5 : vector<1x128xf32> to vector<8x128xf32>
    %31 = arith.addf %29, %30 : vector<8x128xf32>
    %32 = vector.extract_strided_slice %31 {offsets = [0, 0], sizes = [8, 4], strides = [1, 1]} : vector<8x128xf32> to vector<8x4xf32>
    %33 = arith.index_cast %7 : i32 to index
    %c0_18 = arith.constant 0 : index
    %34 = vector.load %arg8[%33, %c0_18] : memref<8x4xf32, #tpu.memory_space<vmem>>, vector<8x4xf32>
    tpu.vector_store %arg8[%33, %c0_18], %32 {strides = array<i32>} : memref<8x4xf32, #tpu.memory_space<vmem>>, vector<8x4xf32>,
    %c1_i32 = arith.constant 1 : i32
    return
  }
  func.func @transform_0(%arg0: i32) -> (i32, i32) {
    %c0_i32 = arith.constant 0 : i32
    %c0_i32_0 = arith.constant 0 : i32
    return %arg0, %c0_i32 : i32, i32
  }
  func.func @transform_1(%arg0: i32) -> (i32, i32) {
    %c0_i32 = arith.constant 0 : i32
    %c0_i32_0 = arith.constant 0 : i32
    %c0_i32_1 = arith.constant 0 : i32
    return %c0_i32, %c0_i32_0 : i32, i32
  }
  func.func @transform_2(%arg0: i32) -> (i32, i32) {
    %c0_i32 = arith.constant 0 : i32
    %c0_i32_0 = arith.constant 0 : i32
    %c0_i32_1 = arith.constant 0 : i32
    return %c0_i32, %c0_i32_0 : i32, i32
  }
  func.func @transform_3(%arg0: i32) -> (i32, i32) {
    %c0_i32 = arith.constant 0 : i32
    %c0_i32_0 = arith.constant 0 : i32
    %c0_i32_1 = arith.constant 0 : i32
    return %c0_i32, %c0_i32_0 : i32, i32
  }
  func.func @transform_4(%arg0: i32) -> (i32, i32) {
    %c0_i32 = arith.constant 0 : i32
    %c0_i32_0 = arith.constant 0 : i32
    %c0_i32_1 = arith.constant 0 : i32
    return %c0_i32, %c0_i32_0 : i32, i32
  }
  func.func @transform_5(%arg0: i32) -> (i32, i32) {
    %c0_i32 = arith.constant 0 : i32
    %c0_i32_0 = arith.constant 0 : i32
    %c0_i32_1 = arith.constant 0 : i32
    return %c0_i32, %c0_i32_0 : i32, i32
  }
  func.func @transform_6(%arg0: i32) -> (i32, i32) {
    %c0_i32 = arith.constant 0 : i32
    %c0_i32_0 = arith.constant 0 : i32
    %c0_i32_1 = arith.constant 0 : i32
    return %c0_i32, %c0_i32_0 : i32, i32
  }
  func.func @transform_7(%arg0: i32) -> (i32, i32) {
    %c0_i32 = arith.constant 0 : i32
    %c0_i32_0 = arith.constant 0 : i32
    return %arg0, %c0_i32 : i32, i32
  }
}

</mosaic_0001>

<bundles_post_ra>
// kernel: tpu_custom_call.1
= control target key start
LH: loop header
LB: loop body
LE: loop exit
PB: predicated region body
PF: predicated region fallthrough
CT: control target
= control target key end

     0   :  { %12 = vsyncpa [#allocation3], 0  ;;  %s578_s0 = inlined_call_operand.hbm [shape: f32[8,32], index: 0, kind: input, shape index: {}]   ;;  %s579_s1 = inlined_call_operand.hbm [shape: bf16[32,128], index: 1, kind: input, shape index: {}]   ;;  %s580_s2 = inlined_call_operand.vmem [shape: f32[1,128], index: 2, kind: input, shape index: {}]   ;;  %s581_s3 = inlined_call_operand.hbm [shape: bf16[128,128], index: 3, kind: input, shape index: {}]   ;;  %s582_s4 = inlined_call_operand.vmem [shape: f32[1,128], index: 4, kind: input, shape index: {}]   ;;  %s583_s5 = inlined_call_operand.hbm [shape: bf16[128,128], index: 5, kind: input, shape index: {}]   ;;  %s584_s6 = inlined_call_operand.vmem [shape: f32[1,128], index: 6, kind: input, shape index: {}]   ;;  %s585_s7 = inlined_call_operand.vmem [shape: f32[8,4], index: 7, kind: output, shape index: {}]  }
   0x1   :  { %13 = vsyncpa [#allocation5], 0  ;;  %s30_s26 = sshll.u32 %s579_s1, 4  ;;  %s31_s26 = int_to_ptr.hbm [resolvable:$true] %s30_s26 }
   0x2   :  { %14 = vsyncpa [#allocation8], 0  ;;  %s508_s27 = smov [#allocation4]   ;;  %s20_s8 = sshll.u32 %s578_s0, 4  ;;  %s21_s8 = int_to_ptr.hbm [resolvable:$true] %s20_s8 }
   0x3   :  { %s32_s28 = sshll.u32 %s508_s27, 4  ;;  %s509_s9 = smov 64   ;;  %s33_s28 = int_to_ptr.vmem [resolvable:$true] %s32_s28 }
   0x4   :  { %s510_s10 = smov 4   ;;  %s511_s11 = smov [#allocation2]  }
   0x5   :  { %38 = dma.hbm_to_vmem [thread:$0]  %s31_s26, 256, %s33_s28, [#allocation5], %s509_s9, %s509_s9, %s510_s10  }
   0x6   :  { %s22_s12 = sshll.u32 %s511_s11, 4  ;;  %s45_s15 = sshll.u32 %s581_s3, 4  ;;  %s23_s12 = int_to_ptr.vmem [resolvable:$true] %s22_s12  ;;  %s46_s15 = int_to_ptr.hbm [resolvable:$true] %s45_s15 }
   0x7   :  { %25 = dma.hbm_to_vmem [thread:$0]  %s21_s8, 128, %s23_s12, [#allocation3]  }
   0x8   :  { %s60_s17 = sshll.u32 %s583_s5, 4  ;;  %s512_s18 = smov [#allocation6]   ;;  %s61_s17 = int_to_ptr.hbm [resolvable:$true] %s60_s17 }
   0x9   :  { %s47_s19 = sshll.u32 %s512_s18, 4  ;;  %s513_s0 = smov [#allocation7]   ;;  %s48_s19 = int_to_ptr.vmem [resolvable:$true] %s47_s19 }
   0xa   :  { %53 = dma.hbm_to_vmem [thread:$0]  %s46_s15, 1024, %s48_s19, [#allocation5], %s509_s9, %s509_s9, %s510_s10  }
   0xb   :  { %s62_s20 = sshll.u32 %s513_s0, 4  ;;  %s63_s20 = int_to_ptr.vmem [resolvable:$true] %s62_s20 }
   0xc   :  { %68 = dma.hbm_to_vmem [thread:$0]  %s61_s17, 1024, %s63_s20, [#allocation8], %s509_s9, %s509_s9, %s510_s10  }
   0xd   :  { %502 = dma.done.wait [#allocation3], 128  }
   0xe   :  { %503 = vsyncadd [#allocation3], 4294967168 }
   0xf   :  { %504 = dma.done.wait [#allocation5], 1280  }
  0x10   :  { %505 = vsyncadd [#allocation5], 4294966016 }
  0x11   :  { %506 = dma.done.wait [#allocation8], 1024  }
  0x12   :  { %507 = vsyncadd [#allocation8], 4294966272  ;;  %v380_v0 = vld [vmem:[#allocation4 + $0x8] sm:$0xff]  ;;  %v379_v2 = vld [vmem:[#allocation4] sm:$0xff]  ;;  %vm144_vm0 = vcmask 261120   ;;  %vm297_vm3 = vcmask 31744  }
  0x13   :  { %v388_v1 = vld [vmem:[#allocation6 + $0x38] sm:$0xff]  ;;  %154 = vmatpush.bf16.msra.mxu0 %v380_v0  ;;  %v127_v3 = vld [vmem:[#allocation2] sm:$0xff]  ;;  %v387_v4 = vld [vmem:[#allocation6 + $0x30] sm:$0xff] }
  0x14   :  { %216 = vmatpush.bf16.msra.mxu1 %v388_v1  ;;  %v128_v5 = vpack.c.bf16 %v127_v3, %v127_v3  ;;  %v386_v6 = vld [vmem:[#allocation6 + $0x28] sm:$0xff]  ;;  %v385_v7 = vld [vmem:[#allocation6 + $0x20] sm:$0xff]  ;;  %v384_v8 = vld [vmem:[#allocation6 + $0x18] sm:$0xff] }
  0x15   :  { %v383_v9 = vld [vmem:[#allocation6 + $0x10] sm:$0xff]  ;;  %v382_v10 = vld [vmem:[#allocation6 + $0x8] sm:$0xff]  ;;  %v381_v11 = vld [vmem:[#allocation6] sm:$0xff] }
  0x16   :  { %v396_v12 = vld [vmem:[#allocation7 + $0x38] sm:$0xff]  ;;  %v395_v13 = vld [vmem:[#allocation7 + $0x30] sm:$0xff]  ;;  %v394_v14 = vld [vmem:[#allocation7 + $0x28] sm:$0xff] }
  0x17   :  { %155 = vmatpush.bf16.msra.mxu0 %v379_v2  ;;  %284 = vmatpush.bf16.msra.mxu2 %v396_v12  ;;  %v393_v15 = vld [vmem:[#allocation7 + $0x20] sm:$0xff]  ;;  %v392_v16 = vld [vmem:[#allocation7 + $0x18] sm:$0xff]  ;;  %v391_v17 = vld [vmem:[#allocation7 + $0x10] sm:$0xff] }
  0x18   :  { %217 = vmatpush.bf16.msra.mxu1 %v387_v4  ;;  %v403_v18 = vld [vmem:[%s580_s2] ss:$0 sm:$0xff]  ;;  %v389_v26 = vld [vmem:[#allocation7] sm:$0xff] }
  0x19   :  { %v390_v25 = vld [vmem:[#allocation7 + $0x8] sm:$0xff] }
  0x1a   :  { %314 = vmatmul.msk.bf16.vlgmr.msra.gmra.mxu0 %vm144_vm0, %v128_v5  ;;  %v404_v27 = vld [vmem:[%s582_s4] ss:$0 sm:$0xff] }
  0x1b   :  { %285 = vmatpush.bf16.msra.mxu2 %v395_v13  ;;  %v405_v34 = vld [vmem:[%s584_s6] ss:$0 sm:$0xff] }
  0x1c   :  { %218 = vmatpush.bf16.msra.mxu1 %v386_v6 }
  0x1f   :  { %286 = vmatpush.bf16.msra.mxu2 %v394_v14 }
  0x20   :  { %219 = vmatpush.bf16.msra.mxu1 %v385_v7 }
  0x23   :  { %287 = vmatpush.bf16.msra.mxu2 %v393_v15 }
  0x24   :  { %220 = vmatpush.bf16.msra.mxu1 %v384_v8 }
  0x27   :  { %288 = vmatpush.bf16.msra.mxu2 %v392_v16 }
  0x28   :  { %221 = vmatpush.bf16.msra.mxu1 %v383_v9 }
  0x2b   :  { %289 = vmatpush.bf16.msra.mxu2 %v391_v17 }
  0x2c   :  { %222 = vmatpush.bf16.msra.mxu1 %v382_v10 }
  0x2f   :  { %290 = vmatpush.bf16.msra.mxu2 %v390_v25 }
  0x30   :  { %223 = vmatpush.bf16.msra.mxu1 %v381_v11 }
  0x33   :  { %291 = vmatpush.bf16.msra.mxu2 %v389_v26 }
  0x97   :  { %v157_v19 = vpop.f32.mrf.mxu0 }
  0x98   :  { %v158_v20 = vadd.f32 %v403_v18, %v157_v19 }
  0x9a   :  { %v162_v21 = vmul.f32 0.1, %v158_v20  ;;  %vm161_vm1 = vcmp.ge.f32.partialorder %v158_v20, 0.0 }
  0x9c   :  { %v163_v22 = vsel %vm161_vm1, %v158_v20, %v162_v21 }
  0x9d   :  { %v164_v23 = vpack.c.bf16 %v163_v22, %v163_v22 }
  0x9f   :  { %v159_v24 = vpop.f32.mrf.mxu0  ;;  %224 = vmatmul.bf16.vlgmr.msra.gmra.mxu1 %v164_v23 }
 0x11c   :  { %v225_v28 = vpop.f32.mrf.mxu1 }
 0x11d   :  { %v226_v29 = vadd.f32 %v404_v27, %v225_v28 }
 0x11f   :  { %v230_v30 = vmul.f32 0.1, %v226_v29  ;;  %vm229_vm2 = vcmp.ge.f32.partialorder %v226_v29, 0.0 }
 0x121   :  { %v231_v31 = vsel %vm229_vm2, %v226_v29, %v230_v30 }
 0x122   :  { %v232_v32 = vpack.c.bf16 %v231_v31, %v231_v31 }
 0x124   :  { %v227_v33 = vpop.f32.mrf.mxu1  ;;  %292 = vmatmul.bf16.vlgmr.msra.gmra.mxu2 %v232_v32 }
 0x1a7   :  { %v293_v35 = vpop.f32.mrf.mxu2 }
 0x1a8   :  { %v294_v36 = vadd.f32 %v405_v34, %v293_v35 }
 0x1aa   :  { %298 = vst.msk [vmem:[%s585_s7] sm:$0xff] %vm297_vm3, %v294_v36 }
 0x1af   :  { %v295_v37 = vpop.f32.mrf.mxu2 }
 0x1b0   :  { %303 = vsyncpa [#allocation3], 1 }
 0x1b1   :  { %304 = vsyncpa [#allocation5], 1 }
 0x1b2   :  { %305 = vsyncpa [#allocation8], 1 }

</bundles_post_ra>
